<compile_context>
chip_gen: v7x
topology: tpu7x:2x2x1
jax: 0.10.0
libtpu: 0.0.40
codegen_flags: <defaults>
</compile_context>

<pallas_src>
import jax
import jax.numpy as jnp
from jax.experimental import pallas as pl
from jax.experimental.pallas import tpu as pltpu

IN_F, H1, H2, OUT_F = 8, 6, 4, 1
PACK = 16                       # samples per 128-lane row (16 * 8 features = 128 lanes)
LANES_IN = PACK * IN_F          # 128
LANES_H1 = PACK * H1            # 96
LANES_H2 = PACK * H2            # 64
LANES_OUT = PACK * OUT_F        # 16


def _sigmoid(z):
    # sigmoid(z) == 0.5 * tanh(z / 2) + 0.5 : one EUP transcendental per element.
    return 0.5 * jnp.tanh(0.5 * z) + 0.5


def mlp_kernel(w1_ref, b1_ref, w2_ref, b2_ref, w3_ref, b3_ref, x_ref, o_ref):
    x = x_ref[...]                                          # (tm, 128): 16 samples per row

    def layer(h, w_ref, b_ref):
        z = jnp.dot(h, w_ref[...],
                    preferred_element_type=jnp.float32,
                    precision=jax.lax.Precision.HIGHEST)    # MXU, exact f32
        return _sigmoid(z + b_ref[...])                     # (1, K) bias broadcast

    h1 = layer(x, w1_ref, b1_ref)                           # (tm, 96)
    h2 = layer(h1, w2_ref, b2_ref)                          # (tm, 64)
    o_ref[...] = layer(h2, w3_ref, b3_ref)                  # (tm, 16) lane-dense store


def mlp_forward(x, params, *, batch_tile=65536):
    """x: (N, 8) float32 in PyTorch layout. Returns (N, 1) float32."""
    w1, b1, w2, b2, w3, b3 = params                         # PyTorch: W (out, in), b (out,)
    n = x.shape[0]

    # Pad batch only up to a multiple of 16 so the lane-packing reshape is exact.
    n_pack = pl.cdiv(n, PACK) * PACK
    if n_pack != n:
        x = jnp.pad(x, ((0, n_pack - n), (0, 0)))
    rows = n_pack // PACK
    xr = x.reshape(rows, LANES_IN)                          # layout-preserving (free) reshape

    # Block-diagonal weights: 16 independent samples per row handled by one matmul.
    eye = jnp.eye(PACK, dtype=jnp.float32)
    w1b = jnp.kron(eye, w1.T)                               # (128, 96)
    w2b = jnp.kron(eye, w2.T)                               # (96, 64)
    w3b = jnp.kron(eye, w3.T)                               # (64, 16)
    b1b = jnp.tile(b1, PACK)[None, :]                       # (1, 96)
    b2b = jnp.tile(b2, PACK)[None, :]                       # (1, 64)
    b3b = jnp.tile(b3, PACK)[None, :]                       # (1, 16)

    # Rows of packed samples per grid step.
    tile_rows = max(1, min(batch_tile // PACK, rows))
    if tile_rows < rows:                                    # non-full blocks must be 8-aligned
        tile_rows = max(8, (tile_rows // 8) * 8)
    grid = (pl.cdiv(rows, tile_rows),)

    def full_spec(shape):                                   # small weights: resident, one DMA
        return pl.BlockSpec(shape, lambda i: (0, 0))

    out = pl.pallas_call(
        mlp_kernel,
        out_shape=jax.ShapeDtypeStruct((rows, LANES_OUT), jnp.float32),
        grid=grid,
        in_specs=[full_spec(w1b.shape), full_spec(b1b.shape),
                  full_spec(w2b.shape), full_spec(b2b.shape),
                  full_spec(w3b.shape), full_spec(b3b.shape),
                  pl.BlockSpec((tile_rows, LANES_IN), lambda i: (i, 0))],
        out_specs=pl.BlockSpec((tile_rows, LANES_OUT), lambda i: (i, 0)),
        compiler_params=pltpu.CompilerParams(
            dimension_semantics=("parallel",),              # shards batch over TCs on v7x
            vmem_limit_bytes=48 * 1024 * 1024),             # ~15 MiB used; headroom on 64 MiB v7x
    )(w1b, b1b, w2b, b2b, w3b, b3b, xr)

    return out.reshape(n_pack, OUT_F)[:n]                   # free reshape + tiny slice


def init_linear(key, fan_in, fan_out):
    # Deterministic init mimicking PyTorch nn.Linear: U(-1/sqrt(fan_in), 1/sqrt(fan_in)).
    kw, kb = jax.random.split(key)
    bound = 1.0 / (fan_in ** 0.5)
    w = jax.random.uniform(kw, (fan_out, fan_in), jnp.float32, -bound, bound)
    b = jax.random.uniform(kb, (fan_out,), jnp.float32, -bound, bound)
    return w, b


def reference(x, params):
    w1, b1, w2, b2, w3, b3 = params
    hi = jax.lax.Precision.HIGHEST
    h = jax.nn.sigmoid(jnp.dot(x, w1.T, precision=hi) + b1)
    h = jax.nn.sigmoid(jnp.dot(h, w2.T, precision=hi) + b2)
    return jax.nn.sigmoid(jnp.dot(h, w3.T, precision=hi) + b3)


if __name__ == "__main__":
    key = jax.random.PRNGKey(0)
    k_x, k_x2, k1, k2, k3 = jax.random.split(key, 5)

    w1, b1 = init_linear(k1, IN_F, H1)
    w2, b2 = init_linear(k2, H1, H2)
    w3, b3 = init_linear(k3, H2, OUT_F)
    params = (w1, b1, w2, b2, w3, b3)

    # Small case matching the module spec (batch=8, in_features=8).
    x = jax.random.normal(k_x, (8, IN_F), jnp.float32)
    out = jax.block_until_ready(mlp_forward(x, params))
    assert out.shape == (8, OUT_F)
    assert jnp.allclose(out, reference(x, params), atol=1e-5, rtol=1e-5)

    # Larger, non-multiple-of-16 batch: exercises the batch pad + single big tile.
    x_big = jax.random.normal(k_x2, (1000, IN_F), jnp.float32)
    ref_big = reference(x_big, params)
    out_big = jax.block_until_ready(mlp_forward(x_big, params))
    assert out_big.shape == (1000, OUT_F)
    assert jnp.allclose(out_big, ref_big, atol=1e-5, rtol=1e-5)

    # Small tile override: exercises a multi-step parallel grid with a partial last block.
    out_tiled = jax.block_until_ready(mlp_forward(x_big, params, batch_tile=256))
    assert out_tiled.shape == (1000, OUT_F)
    assert jnp.allclose(out_tiled, ref_big, atol=1e-5, rtol=1e-5)

    print("KERNEL_OK")
</pallas_src>

<mosaic_0001>
module attributes {stable_mosaic.version = 11 : i64} {
  func.func @mlp_kernel(%arg0: i32, %arg1: memref<128x96xf32, #tpu.memory_space<vmem>>, %arg2: memref<1x96xf32, #tpu.memory_space<vmem>>, %arg3: memref<96x64xf32, #tpu.memory_space<vmem>>, %arg4: memref<1x64xf32, #tpu.memory_space<vmem>>, %arg5: memref<64x16xf32, #tpu.memory_space<vmem>>, %arg6: memref<1x16xf32, #tpu.memory_space<vmem>>, %arg7: memref<1x128xf32, #tpu.memory_space<vmem>>, %arg8: memref<1x16xf32, #tpu.memory_space<vmem>>) attributes {dimension_semantics = [#tpu.dimension_semantics<parallel>], iteration_bounds = array<i64: 1>, scalar_prefetch = 0 : i64, scratch_operands = 0 : i64, tpu.core_type = #tpu.core_type<tc>, window_params = [{pipeline_mode = #tpu.pipeline_mode<synchronous>, transform_indices = @transform_0, window_bounds = array<i64: 128, 96>}, {pipeline_mode = #tpu.pipeline_mode<synchronous>, transform_indices = @transform_1, window_bounds = array<i64: 1, 96>}, {pipeline_mode = #tpu.pipeline_mode<synchronous>, transform_indices = @transform_2, window_bounds = array<i64: 96, 64>}, {pipeline_mode = #tpu.pipeline_mode<synchronous>, transform_indices = @transform_3, window_bounds = array<i64: 1, 64>}, {pipeline_mode = #tpu.pipeline_mode<synchronous>, transform_indices = @transform_4, window_bounds = array<i64: 64, 16>}, {pipeline_mode = #tpu.pipeline_mode<synchronous>, transform_indices = @transform_5, window_bounds = array<i64: 1, 16>}, {transform_indices = @transform_6, window_bounds = array<i64: 1, 128>}, {transform_indices = @transform_7, window_bounds = array<i64: 1, 16>}]} {
    %c0 = arith.constant 0 : index
    %c0_0 = arith.constant 0 : index
    %0 = vector.load %arg7[%c0, %c0_0] : memref<1x128xf32, #tpu.memory_space<vmem>>, vector<1x128xf32>
    %c0_1 = arith.constant 0 : index
    %c0_2 = arith.constant 0 : index
    %1 = vector.load %arg1[%c0_1, %c0_2] : memref<128x96xf32, #tpu.memory_space<vmem>>, vector<128x96xf32>
    %cst = arith.constant dense<0.000000e+00> : vector<1x96xf32>
    %2 = tpu.matmul %0, %1, %cst {dimension_numbers = #tpu.dot_dimension_numbers<[1], [0], [0], [1], [0, 0, 1, 1], [], []>, precision = #tpu.contract_precision<fp32>} : vector<1x128xf32>, vector<128x96xf32>, vector<1x96xf32> -> vector<1x96xf32>
    %c0_3 = arith.constant 0 : index
    %c0_4 = arith.constant 0 : index
    %3 = vector.load %arg2[%c0_3, %c0_4] : memref<1x96xf32, #tpu.memory_space<vmem>>, vector<1x96xf32>
    %4 = arith.addf %2, %3 : vector<1x96xf32>
    %cst_5 = arith.constant 5.000000e-01 : f32
    %5 = vector.broadcast %cst_5 : f32 to vector<1x96xf32>
    %6 = arith.mulf %5, %4 : vector<1x96xf32>
    %7 = math.tanh %6 : vector<1x96xf32>
    %cst_6 = arith.constant 5.000000e-01 : f32
    %8 = vector.broadcast %cst_6 : f32 to vector<1x96xf32>
    %9 = arith.mulf %8, %7 : vector<1x96xf32>
    %cst_7 = arith.constant 5.000000e-01 : f32
    %10 = vector.broadcast %cst_7 : f32 to vector<1x96xf32>
    %11 = arith.addf %9, %10 : vector<1x96xf32>
    %c0_8 = arith.constant 0 : index
    %c0_9 = arith.constant 0 : index
    %12 = vector.load %arg3[%c0_8, %c0_9] : memref<96x64xf32, #tpu.memory_space<vmem>>, vector<96x64xf32>
    %cst_10 = arith.constant dense<0.000000e+00> : vector<1x64xf32>
    %13 = tpu.matmul %11, %12, %cst_10 {dimension_numbers = #tpu.dot_dimension_numbers<[1], [0], [0], [1], [0, 0, 1, 1], [], []>, precision = #tpu.contract_precision<fp32>} : vector<1x96xf32>, vector<96x64xf32>, vector<1x64xf32> -> vector<1x64xf32>
    %c0_11 = arith.constant 0 : index
    %c0_12 = arith.constant 0 : index
    %14 = vector.load %arg4[%c0_11, %c0_12] : memref<1x64xf32, #tpu.memory_space<vmem>>, vector<1x64xf32>
    %15 = arith.addf %13, %14 : vector<1x64xf32>
    %cst_13 = arith.constant 5.000000e-01 : f32
    %16 = vector.broadcast %cst_13 : f32 to vector<1x64xf32>
    %17 = arith.mulf %16, %15 : vector<1x64xf32>
    %18 = math.tanh %17 : vector<1x64xf32>
    %cst_14 = arith.constant 5.000000e-01 : f32
    %19 = vector.broadcast %cst_14 : f32 to vector<1x64xf32>
    %20 = arith.mulf %19, %18 : vector<1x64xf32>
    %cst_15 = arith.constant 5.000000e-01 : f32
    %21 = vector.broadcast %cst_15 : f32 to vector<1x64xf32>
    %22 = arith.addf %20, %21 : vector<1x64xf32>
    %c0_16 = arith.constant 0 : index
    %c0_17 = arith.constant 0 : index
    %23 = vector.load %arg5[%c0_16, %c0_17] : memref<64x16xf32, #tpu.memory_space<vmem>>, vector<64x16xf32>
    %cst_18 = arith.constant dense<0.000000e+00> : vector<1x16xf32>
    %24 = tpu.matmul %22, %23, %cst_18 {dimension_numbers = #tpu.dot_dimension_numbers<[1], [0], [0], [1], [0, 0, 1, 1], [], []>, precision = #tpu.contract_precision<fp32>} : vector<1x64xf32>, vector<64x16xf32>, vector<1x16xf32> -> vector<1x16xf32>
    %c0_19 = arith.constant 0 : index
    %c0_20 = arith.constant 0 : index
    %25 = vector.load %arg6[%c0_19, %c0_20] : memref<1x16xf32, #tpu.memory_space<vmem>>, vector<1x16xf32>
    %26 = arith.addf %24, %25 : vector<1x16xf32>
    %cst_21 = arith.constant 5.000000e-01 : f32
    %27 = vector.broadcast %cst_21 : f32 to vector<1x16xf32>
    %28 = arith.mulf %27, %26 : vector<1x16xf32>
    %29 = math.tanh %28 : vector<1x16xf32>
    %cst_22 = arith.constant 5.000000e-01 : f32
    %30 = vector.broadcast %cst_22 : f32 to vector<1x16xf32>
    %31 = arith.mulf %30, %29 : vector<1x16xf32>
    %cst_23 = arith.constant 5.000000e-01 : f32
    %32 = vector.broadcast %cst_23 : f32 to vector<1x16xf32>
    %33 = arith.addf %31, %32 : vector<1x16xf32>
    %c0_24 = arith.constant 0 : index
    %c0_25 = arith.constant 0 : index
    %34 = vector.load %arg8[%c0_24, %c0_25] : memref<1x16xf32, #tpu.memory_space<vmem>>, vector<1x16xf32>
    tpu.vector_store %arg8[%c0_24, %c0_25], %33 {strides = array<i32>} : memref<1x16xf32, #tpu.memory_space<vmem>>, vector<1x16xf32>,
    return
  }
  func.func @transform_0(%arg0: i32) -> (i32, i32) {
    %c0_i32 = arith.constant 0 : i32
    %c0_i32_0 = arith.constant 0 : i32
    %c0_i32_1 = arith.constant 0 : i32
    return %c0_i32, %c0_i32_0 : i32, i32
  }
  func.func @transform_1(%arg0: i32) -> (i32, i32) {
    %c0_i32 = arith.constant 0 : i32
    %c0_i32_0 = arith.constant 0 : i32
    %c0_i32_1 = arith.constant 0 : i32
    return %c0_i32, %c0_i32_0 : i32, i32
  }
  func.func @transform_2(%arg0: i32) -> (i32, i32) {
    %c0_i32 = arith.constant 0 : i32
    %c0_i32_0 = arith.constant 0 : i32
    %c0_i32_1 = arith.constant 0 : i32
    return %c0_i32, %c0_i32_0 : i32, i32
  }
  func.func @transform_3(%arg0: i32) -> (i32, i32) {
    %c0_i32 = arith.constant 0 : i32
    %c0_i32_0 = arith.constant 0 : i32
    %c0_i32_1 = arith.constant 0 : i32
    return %c0_i32, %c0_i32_0 : i32, i32
  }
  func.func @transform_4(%arg0: i32) -> (i32, i32) {
    %c0_i32 = arith.constant 0 : i32
    %c0_i32_0 = arith.constant 0 : i32
    %c0_i32_1 = arith.constant 0 : i32
    return %c0_i32, %c0_i32_0 : i32, i32
  }
  func.func @transform_5(%arg0: i32) -> (i32, i32) {
    %c0_i32 = arith.constant 0 : i32
    %c0_i32_0 = arith.constant 0 : i32
    %c0_i32_1 = arith.constant 0 : i32
    return %c0_i32, %c0_i32_0 : i32, i32
  }
  func.func @transform_6(%arg0: i32) -> (i32, i32) {
    %c0_i32 = arith.constant 0 : i32
    %c0_i32_0 = arith.constant 0 : i32
    return %arg0, %c0_i32 : i32, i32
  }
  func.func @transform_7(%arg0: i32) -> (i32, i32) {
    %c0_i32 = arith.constant 0 : i32
    %c0_i32_0 = arith.constant 0 : i32
    return %arg0, %c0_i32 : i32, i32
  }
}

</mosaic_0001>

<bundles_post_ra>
// kernel: tpu_custom_call.1
= control target key start
LH: loop header
LB: loop body
LE: loop exit
PB: predicated region body
PF: predicated region fallthrough
CT: control target
= control target key end

     0   :  { %v2980_v3 = vmov 0.0|0.0   ;;  %vm2981_vm0 = vmmov 0   ;;  %v2982_v8 = vmov 0.0   ;;  %s3707_s0 = inlined_call_operand.vmem [shape: f32[128,96], index: 0, kind: input, shape index: {}]   ;;  %s3708_s1 = inlined_call_operand.vmem [shape: f32[1,96], index: 1, kind: input, shape index: {}]   ;;  %s3709_s2 = inlined_call_operand.vmem [shape: f32[96,64], index: 2, kind: input, shape index: {}]   ;;  %s3710_s3 = inlined_call_operand.vmem [shape: f32[1,64], index: 3, kind: input, shape index: {}]   ;;  %s3711_s4 = inlined_call_operand.vmem [shape: f32[64,16], index: 4, kind: input, shape index: {}]   ;;  %s3712_s5 = inlined_call_operand.vmem [shape: f32[1,16], index: 5, kind: input, shape index: {}]   ;;  %s3713_s6 = inlined_call_operand.vmem [shape: f32[1,128], index: 6, kind: input, shape index: {}]   ;;  %s3714_s7 = inlined_call_operand.hbm [shape: f32[1,16], index: 7, kind: output, shape index: {}]  }
   0x1   :  { %v28_v0 = vld [vmem:[%s3707_s0] sm:$0xff]  ;;  %v29_v1 = vld [vmem:[%s3707_s0 + $0x8] sm:$0xff]  ;;  %v30_v2 = vld [vmem:[%s3707_s0 + $0x10] sm:$0xff]  ;;  %2590 = vmatprep.subr.bf16.mxu0 %v2980_v3  ;;  %2136 = vmatprep.mubr.msk.f32.mxu0 %vm2981_vm0, %v2982_v8 }
   0x2   :  { %v46_v4 = vand.u32 4294901760, %v28_v0  ;;  %v49_v5 = vand.u32 4294901760, %v29_v1  ;;  %v31_v6 = vld [vmem:[%s3707_s0 + $0x18] sm:$0xff]  ;;  %v52_v7 = vand.u32 4294901760, %v30_v2  ;;  %v32_v10 = vld [vmem:[%s3707_s0 + $0x20] sm:$0xff]  ;;  %v33_v11 = vld [vmem:[%s3707_s0 + $0x28] sm:$0xff]  ;;  %2752 = vmatprep.subr.bf16.mxu1 %v2980_v3  ;;  %2365 = vmatprep.mubr.msk.f32.mxu1 %vm2981_vm0, %v2982_v8 }
   0x3   :  { %v55_v9 = vand.u32 4294901760, %v31_v6  ;;  %v58_v14 = vand.u32 4294901760, %v32_v10  ;;  %v61_v15 = vand.u32 4294901760, %v33_v11  ;;  %v34_v16 = vld [vmem:[%s3707_s0 + $0x30] sm:$0xff]  ;;  %v35_v17 = vld [vmem:[%s3707_s0 + $0x38] sm:$0xff] }
   0x4   :  { %v3048_v12 = vpack.c.bf16 %v49_v5, %v46_v4 }
   0x5   :  { %v3051_v13 = vpack.c.bf16 %v55_v9, %v52_v7 }
   0x6   :  { %2592 = vmatpush3.bf16.msra.mxu0 %v3048_v12 }
   0x7   :  { %2593 = vmatprep.subr.bf16.mxu0 %v2980_v3 }
   0x8   :  { %12 = vsyncpa [#allocation3], 0  ;;  %v3061_v18 = vpack.c.bf16 %v61_v15, %v58_v14  ;;  %v64_v19 = vand.u32 4294901760, %v34_v16  ;;  %v67_v20 = vand.u32 4294901760, %v35_v17  ;;  %v36_v21 = vld [vmem:[%s3707_s0 + $0x40] sm:$0xff]  ;;  %v37_v22 = vld [vmem:[%s3707_s0 + $0x48] sm:$0xff]  ;;  %v3073_v24 = vsub.f32 %v28_v0, %v46_v4 }
   0x9   :  { %v27_v23 = vld [vmem:[%s3713_s6] sm:$0x1]  ;;  %v3075_v25 = vsub.f32 %v29_v1, %v49_v5  ;;  %v70_v27 = vand.u32 4294901760, %v36_v21  ;;  %v73_v28 = vand.u32 4294901760, %v37_v22  ;;  %v38_v29 = vld [vmem:[%s3707_s0 + $0x50] sm:$0xff]  ;;  %v39_v30 = vld [vmem:[%s3707_s0 + $0x58] sm:$0xff]  ;;  %v3092_v33 = vsub.f32 %v30_v2, %v52_v7 }
   0xa   :  { %2595 = vmatpush3.bf16.msra.mxu0 %v3051_v13  ;;  %v3078_v26 = vpack.c.bf16 %v67_v20, %v64_v19  ;;  %v3087_v31 = vand.u32 4294901760, %v27_v23  ;;  %v40_v32 = vld [vmem:[%s3707_s0 + $0x60] sm:$0xff]  ;;  %v76_v34 = vand.u32 4294901760, %v38_v29  ;;  %v41_v35 = vld [vmem:[%s3707_s0 + $0x68] sm:$0xff]  ;;  %v42_v36 = vld [vmem:[%s3707_s0 + $0x70] sm:$0xff]  ;;  %v79_v39 = vand.u32 4294901760, %v39_v30 }
   0xb   :  { %2596 = vmatprep.subr.bf16.mxu0 %v2980_v3  ;;  %v43_v37 = vld [vmem:[%s3707_s0 + $0x78] sm:$0xff]  ;;  %v3104_v38 = vpack.c.bf16 %v73_v28, %v70_v27  ;;  %v139_v40 = vand.u32 4294901760, %v3073_v24  ;;  %v146_v41 = vand.u32 4294901760, %v3075_v25  ;;  %v3108_v42 = vsub.f32 %v31_v6, %v55_v9  ;;  %s2983_s6 = smov [#allocation2]  }
   0xc   :  { %v3110_v43 = vsub.f32 %v32_v10, %v58_v14  ;;  %v3112_v44 = vsub.f32 %v33_v11, %v61_v15  ;;  %v3116_v45 = vsub.f32 %v27_v23, %v3087_v31  ;;  %v82_v46 = vand.u32 4294901760, %v40_v32  ;;  %s1862_s27 = sshll.u32 %s2983_s6, 4  ;;  %s1863_s27 = int_to_ptr.vmem [resolvable:$true] %s1862_s27 }
   0xd   :  { %v85_v47 = vand.u32 4294901760, %v41_v35  ;;  %v88_v48 = vand.u32 4294901760, %v42_v36  ;;  %v91_v49 = vand.u32 4294901760, %v43_v37  ;;  %v3118_v50 = vsub.f32 %v34_v16, %v64_v19  ;;  %s2956_s28 = scalar_lea.vmem %s1863_s27, 16  ;;  %s2960_s29 = scalar_lea.vmem %s1863_s27, 32 }
   0xe   :  { %2598 = vmatpush3.bf16.msra.mxu0 %v3061_v18  ;;  %v3120_v51 = vsub.f32 %v35_v17, %v67_v20  ;;  %v3122_v52 = vsub.f32 %v36_v21, %v70_v27  ;;  %v153_v53 = vand.u32 4294901760, %v3092_v33  ;;  %v3126_v54 = vsub.f32 %v37_v22, %v73_v28  ;;  %p2957_p0 = scmp.ne.s32.totalorder %s1863_s27, %s2956_s28  ;;  %p2961_p1 = scmp.lt.s32.totalorder %s1863_s27, %s1863_s27 }
   0xf   :  { %2599 = vmatprep.subr.bf16.mxu0 %v2980_v3  ;;  %v3128_v55 = vpack.c.bf16 %v79_v39, %v76_v34  ;;  %v140_v56 = vsub.f32 %v3073_v24, %v139_v40  ;;  %v147_v57 = vsub.f32 %v3075_v25, %v146_v41  ;;  %v3133_v58 = vsub.f32 %v38_v29, %v76_v34  ;;  %p2962_p2 = scmp.lt.s32.totalorder %s2960_s29, %s2956_s28 }
  0x10   :  { %v3135_v59 = vsub.f32 %v39_v30, %v79_v39  ;;  %v3137_v60 = vsub.f32 %v40_v32, %v82_v46  ;;  %v128_v61 = vand.u32 4294901760, %v3116_v45  ;;  %v3140_v62 = vpack.c.bf16 %v85_v47, %v82_v46 }
  0x11   :  { %v3142_v63 = vsub.f32 %v41_v35, %v85_v47  ;;  %v3144_v0 = vpack.c.bf16 %v91_v49, %v88_v48  ;;  %v3146_v1 = vsub.f32 %v42_v36, %v88_v48  ;;  %v3148_v2 = vsub.f32 %v43_v37, %v91_v49  ;;  %p2963_p3 = por %p2962_p2, %p2961_p1 }
  0x12   :  { %2601 = vmatpush3.bf16.msra.mxu0 %v3078_v26  ;;  %v154_v4 = vsub.f32 %v3092_v33, %v153_v53  ;;  %v160_v5 = vand.u32 4294901760, %v3108_v42  ;;  %v167_v6 = vand.u32 4294901760, %v3110_v43  ;;  %v141_v7 = vand.u32 4294901760, %v140_v56 }
  0x13   :  { %2602 = vmatprep.subr.bf16.mxu0 %v2980_v3  ;;  %v148_v9 = vand.u32 4294901760, %v147_v57  ;;  %v174_v10 = vand.u32 4294901760, %v3112_v44  ;;  %v181_v11 = vand.u32 4294901760, %v3118_v50  ;;  %v129_v14 = vsub.f32 %v3116_v45, %v128_v61  ;;  %p2964_p4 = pnand %p2963_p3, %p2957_p0 }
  0x14   :  { %v188_v15 = vand.u32 4294901760, %v3120_v51  ;;  %v195_v16 = vand.u32 4294901760, %v3122_v52  ;;  %v202_v17 = vand.u32 4294901760, %v3126_v54  ;;  %v209_v19 = vand.u32 4294901760, %v3133_v58 }
  0x15   :  { %v216_v20 = vand.u32 4294901760, %v3135_v59  ;;  %v223_v21 = vand.u32 4294901760, %v3137_v60  ;;  %v230_v22 = vand.u32 4294901760, %v3142_v63  ;;  %v237_v23 = vand.u32 4294901760, %v3146_v1 }
  0x16   :  { %2604 = vmatpush3.bf16.msra.mxu0 %v3104_v38  ;;  %v244_v27 = vand.u32 4294901760, %v3148_v2  ;;  %v3169_v28 = vpack.c.bf16 %v146_v41, %v139_v40  ;;  %v3171_v29 = vpack.c.bf16 %v160_v5, %v153_v53  ;;  %v161_v30 = vsub.f32 %v3108_v42, %v160_v5 }
  0x17   :  { %2605 = vmatprep.subr.bf16.mxu0 %v2980_v3  ;;  %v3175_v32 = vpack.c.bf16 %v174_v10, %v167_v6  ;;  %v3177_v34 = vpack.c.bf16 %v188_v15, %v181_v11  ;;  %v3179_v35 = vpack.c.bf16 %v202_v17, %v195_v16  ;;  %v3182_v36 = vpack.c.bf16 %v216_v20, %v209_v19 }
  0x18   :  { %v3184_v37 = vpack.c.bf16 %v230_v22, %v223_v21  ;;  %v3186_v39 = vpack.c.bf16 %v244_v27, %v237_v23  ;;  %v130_v40 = vand.u32 4294901760, %v129_v14  ;;  %v155_v41 = vand.u32 4294901760, %v154_v4 }
  0x19   :  { %v2615_v46 = vpack.c.bf16 %v148_v9, %v141_v7  ;;  %v162_v47 = vand.u32 4294901760, %v161_v30  ;;  %v168_v48 = vsub.f32 %v3110_v43, %v167_v6  ;;  %v175_v49 = vsub.f32 %v3112_v44, %v174_v10 }
  0x1a   :  { %2607 = vmatpush3.bf16.msra.mxu0 %v3128_v55  ;;  %v182_v53 = vsub.f32 %v3118_v50, %v181_v11  ;;  %v189_v14 = vsub.f32 %v3120_v51, %v188_v15  ;;  %v196_v4 = vsub.f32 %v3122_v52, %v195_v16  ;;  %v203_v10 = vsub.f32 %v3126_v54, %v202_v17 }
  0x1b   :  { %2608 = vmatprep.subr.bf16.mxu0 %v2980_v3  ;;  %v2618_v56 = vpack.c.bf16 %v162_v47, %v155_v41  ;;  %v169_v57 = vand.u32 4294901760, %v168_v48  ;;  %v176_v5 = vand.u32 4294901760, %v175_v49  ;;  %v210_v15 = vsub.f32 %v3133_v58, %v209_v19 }
  0x1c   :  { %v183_v7 = vand.u32 4294901760, %v182_v53  ;;  %v190_v9 = vand.u32 4294901760, %v189_v14  ;;  %v197_v11 = vand.u32 4294901760, %v196_v4  ;;  %v217_v41 = vsub.f32 %v3135_v59, %v216_v20 }
  0x1d   :  { %v2621_v6 = vpack.c.bf16 %v176_v5, %v169_v57  ;;  %v224_v16 = vsub.f32 %v3137_v60, %v223_v21  ;;  %v211_v47 = vand.u32 4294901760, %v210_v15  ;;  %v231_v17 = vsub.f32 %v3142_v63, %v230_v22 }
  0x1e   :  { %2610 = vmatpush3.bf16.msra.mxu0 %v3140_v62  ;;  %v2624_v30 = vpack.c.bf16 %v190_v9, %v183_v7  ;;  %v218_v48 = vand.u32 4294901760, %v217_v41  ;;  %v238_v19 = vsub.f32 %v3146_v1, %v237_v23  ;;  %v245_v20 = vsub.f32 %v3148_v2, %v244_v27  ;;  %v3218_v23 = vld [vmem:[%s3709_s2] sm:$0xff]  ;;  %v3223_v27 = vld [vmem:[%s3709_s2 + $0x8] sm:$0xff] }
  0x1f   :  { %2611 = vmatprep.subr.bf16.mxu0 %v2980_v3  ;;  %v225_v49 = vand.u32 4294901760, %v224_v16  ;;  %v2639_v14 = vpack.c.bf16 %v3075_v25, %v3073_v24  ;;  %v2642_v4 = vpack.c.bf16 %v3108_v42, %v3092_v33  ;;  %v708_v24 = vand.u32 4294901760, %v3218_v23 }
  0x20   :  { %v2630_v53 = vpack.c.bf16 %v218_v48, %v211_v47  ;;  %v239_v57 = vand.u32 4294901760, %v238_v19  ;;  %v246_v5 = vand.u32 4294901760, %v245_v20  ;;  %v711_v25 = vand.u32 4294901760, %v3223_v27  ;;  %v698_v47 = vld [vmem:[%s3709_s2 + $0x40] sm:$0xff]  ;;  %v699_v48 = vld [vmem:[%s3709_s2 + $0x48] sm:$0xff] }
  0x21   :  { %v2645_v33 = vpack.c.bf16 %v3112_v44, %v3110_v43  ;;  %v2651_v15 = vpack.c.bf16 %v3126_v54, %v3122_v52  ;;  %v2654_v41 = vpack.c.bf16 %v3135_v59, %v3133_v58  ;;  %v3353_v52 = vld [vmem:[%s3709_s2 + $0x28] sm:$0xff]  ;;  %vm703_vm1 = vcmask 785408  }
  0x22   :  { %2613 = vmatpush3.bf16.msra.mxu0 %v3144_v0  ;;  %v2636_v22 = vpack.c.bf16 %v246_v5, %v239_v57  ;;  %v3240_v7 = vsub.f32 %v3223_v27, %v711_v25  ;;  %v723_v59 = vand.u32 4294901760, %v3353_v52  ;;  %vm1309_vm2 = vcmask 523264  }
  0x23   :  { %2614 = vmatprep.subr.bf16.mxu0 %v2980_v3  ;;  %vm1854_vm3 = vcmask 122880  }
  0x24   :  { %v804_v9 = vand.u32 4294901760, %v3240_v7 }
  0x25   :  { %2137 = vmatmul.mubr.f32.vlgmr.msra.gmra.mrb[0].mxu0 %v130_v40  ;;  %v204_v40 = vand.u32 4294901760, %v203_v10 }
  0x26   :  { %2616 = vmatpush3.bf16.msra.mxu0 %v2615_v46  ;;  %2171 = vmatprep.mubr.msk.f32.mxu0 %vm2981_vm0, %v2982_v8 }
  0x27   :  { %2617 = vmatprep.subr.bf16.mxu0 %v2980_v3  ;;  %v2627_v46 = vpack.c.bf16 %v204_v40, %v197_v11  ;;  %v805_v11 = vsub.f32 %v3240_v7, %v804_v9 }
  0x29   :  { %v806_v43 = vand.u32 4294901760, %v805_v11 }
  0x2a   :  { %2619 = vmatpush3.bf16.msra.mxu0 %v2618_v56  ;;  %v232_v56 = vand.u32 4294901760, %v231_v17 }
  0x2b   :  { %2620 = vmatprep.subr.bf16.mxu0 %v2980_v3 }
  0x2c   :  { %v2633_v21 = vpack.c.bf16 %v232_v56, %v225_v49  ;;  %v735_v56 = vand.u32 4294901760, %v699_v48 }
  0x2e   :  { %2622 = vmatpush3.bf16.msra.mxu0 %v2621_v6  ;;  %v3235_v6 = vsub.f32 %v3218_v23, %v708_v24  ;;  %v3412_v5 = vsub.f32 %v699_v48, %v735_v56  ;;  %v701_v23 = vld [vmem:[%s3709_s2 + $0x58] sm:$0xff] }
  0x2f   :  { %2623 = vmatprep.subr.bf16.mxu0 %v2980_v3 }
  0x30   :  { %v797_v42 = vand.u32 4294901760, %v3235_v6 }
  0x32   :  { %2625 = vmatpush3.bf16.msra.mxu0 %v2624_v30  ;;  %v798_v10 = vsub.f32 %v3235_v6, %v797_v42  ;;  %v2648_v30 = vpack.c.bf16 %v3120_v51, %v3118_v50  ;;  %v2657_v50 = vpack.c.bf16 %v3142_v63, %v3137_v60  ;;  %v2660_v51 = vpack.c.bf16 %v3148_v2, %v3146_v1  ;;  %v3383_v1 = vld [vmem:[%s3709_s2 + $0x38] sm:$0xff] }
  0x33   :  { %2626 = vmatprep.subr.bf16.mxu0 %v2980_v3  ;;  %v3373_v63 = vsub.f32 %v3353_v52, %v723_v59 }
  0x34   :  { %v799_v40 = vand.u32 4294901760, %v798_v10  ;;  %v741_v10 = vand.u32 4294901760, %v701_v23 }
  0x36   :  { %2628 = vmatpush3.bf16.msra.mxu0 %v2627_v46  ;;  %v2753_v44 = vpack.c.bf16 %v806_v43, %v799_v40 }
  0x37   :  { %2629 = vmatprep.subr.bf16.mxu0 %v2980_v3 }
  0x38   :  { %2754 = vmatpush3.bf16.msra.mxu1 %v2753_v44 }
  0x39   :  { %2755 = vmatprep.subr.bf16.mxu1 %v2980_v3 }
  0x3a   :  { %2631 = vmatpush3.bf16.msra.mxu0 %v2630_v53  ;;  %v732_v53 = vand.u32 4294901760, %v698_v47 }
  0x3b   :  { %2632 = vmatprep.subr.bf16.mxu0 %v2980_v3 }
  0x3c   :  { %v3410_v57 = vsub.f32 %v698_v47, %v732_v53 }
  0x3e   :  { %2634 = vmatpush3.bf16.msra.mxu0 %v2633_v21  ;;  %v853_v27 = vand.u32 4294901760, %v3410_v57 }
  0x3f   :  { %2635 = vmatprep.subr.bf16.mxu0 %v2980_v3 }
  0x40   :  { %v854_v40 = vsub.f32 %v3410_v57, %v853_v27 }
  0x42   :  { %2637 = vmatpush3.bf16.msra.mxu0 %v2636_v22  ;;  %v3418_v22 = vpack.c.bf16 %v711_v25, %v708_v24  ;;  %v860_v24 = vand.u32 4294901760, %v3412_v5 }
  0x43   :  { %2638 = vmatprep.subr.bf16.mxu0 %v2980_v3 }
  0x44   :  { %v861_v43 = vsub.f32 %v3412_v5, %v860_v24 }
  0x45   :  { %2172 = vmatmul.mubr.f32.vlgmr.msra.gmra.mrb[0].mxu0 %v3087_v31 }
  0x46   :  { %2640 = vmatpush3.bf16.msra.mxu0 %v2639_v14  ;;  %2206 = vmatprep.mubr.msk.f32.mxu0 %vm2981_vm0, %v2982_v8 }
  0x47   :  { %2641 = vmatprep.subr.bf16.mxu0 %v2980_v3 }
  0x4a   :  { %2643 = vmatpush3.bf16.msra.mxu0 %v2642_v4 }
  0x4b   :  { %2644 = vmatprep.subr.bf16.mxu0 %v2980_v3 }
  0x4e   :  { %2646 = vmatpush3.bf16.msra.mxu0 %v2645_v33  ;;  %v700_v33 = vld [vmem:[%s3709_s2 + $0x50] sm:$0xff] }
  0x4f   :  { %2647 = vmatprep.subr.bf16.mxu0 %v2980_v3  ;;  %v738_v25 = vand.u32 4294901760, %v700_v33 }
  0x51   :  { %v3443_v44 = vsub.f32 %v700_v33, %v738_v25 }
  0x52   :  { %2649 = vmatpush3.bf16.msra.mxu0 %v2648_v30 }
  0x53   :  { %2650 = vmatprep.subr.bf16.mxu0 %v2980_v3 }
  0x56   :  { %2652 = vmatpush3.bf16.msra.mxu0 %v2651_v15  ;;  %v3445_v15 = vsub.f32 %v701_v23, %v741_v10 }
  0x57   :  { %2653 = vmatprep.subr.bf16.mxu0 %v2980_v3 }
  0x5a   :  { %2655 = vmatpush3.bf16.msra.mxu0 %v2654_v41 }
  0x5b   :  { %2656 = vmatprep.subr.bf16.mxu0 %v2980_v3 }
  0x5e   :  { %2658 = vmatpush3.bf16.msra.mxu0 %v2657_v50 }
  0x5f   :  { %2659 = vmatprep.subr.bf16.mxu0 %v2980_v3 }
  0x62   :  { %2661 = vmatpush3.bf16.msra.mxu0 %v2660_v51  ;;  %v855_v51 = vand.u32 4294901760, %v854_v40 }
  0x63   :  { %2662 = vmatprep.subr.bf16.mxu0 %v2980_v3 }
  0x65   :  { %2207 = vmatmul.mubr.f32.vlgmr.msra.gmra.mrb[0].mxu0 %v3116_v45 }
  0x66   :  { %2664 = vmatpush3.bf16.msra.mxu0 %v3048_v12  ;;  %2241 = vmatprep.mubr.msk.f32.mxu0 %vm2981_vm0, %v2982_v8 }
  0x67   :  { %2665 = vmatprep.subr.bf16.mxu0 %v2980_v3 }
  0x6a   :  { %2667 = vmatpush3.bf16.msra.mxu0 %v3051_v13 }
  0x6b   :  { %2668 = vmatprep.subr.bf16.mxu0 %v2980_v3 }
  0x6e   :  { %2670 = vmatpush3.bf16.msra.mxu0 %v3061_v18 }
  0x6f   :  { %2671 = vmatprep.subr.bf16.mxu0 %v2980_v3 }
  0x72   :  { %2673 = vmatpush3.bf16.msra.mxu0 %v3078_v26 }
  0x73   :  { %2674 = vmatprep.subr.bf16.mxu0 %v2980_v3 }
  0x76   :  { %2676 = vmatpush3.bf16.msra.mxu0 %v3104_v38 }
  0x77   :  { %2677 = vmatprep.subr.bf16.mxu0 %v2980_v3 }
  0x7a   :  { %2679 = vmatpush3.bf16.msra.mxu0 %v3128_v55 }
  0x7b   :  { %2680 = vmatprep.subr.bf16.mxu0 %v2980_v3 }
  0x7e   :  { %2682 = vmatpush3.bf16.msra.mxu0 %v3140_v62 }
  0x7f   :  { %2683 = vmatprep.subr.bf16.mxu0 %v2980_v3 }
  0x82   :  { %2685 = vmatpush3.bf16.msra.mxu0 %v3144_v0 }
  0x83   :  { %2686 = vmatprep.subr.bf16.mxu0 %v2980_v3 }
  0x85   :  { %2242 = vmatmul.mubr.f32.vlgmr.msra.gmra.mrb[0].mxu0 %v128_v61 }
  0x86   :  { %2688 = vmatpush3.bf16.msra.mxu0 %v3169_v28  ;;  %2276 = vmatprep.mubr.msk.f32.mxu0 %vm2981_vm0, %v2982_v8 }
  0x87   :  { %2689 = vmatprep.subr.bf16.mxu0 %v2980_v3 }
  0x8a   :  { %2691 = vmatpush3.bf16.msra.mxu0 %v3171_v29 }
  0x8b   :  { %2692 = vmatprep.subr.bf16.mxu0 %v2980_v3 }
  0x8e   :  { %2694 = vmatpush3.bf16.msra.mxu0 %v3175_v32  ;;  %v832_v32 = vand.u32 4294901760, %v3373_v63 }
  0x8f   :  { %2695 = vmatprep.subr.bf16.mxu0 %v2980_v3 }
  0x92   :  { %2697 = vmatpush3.bf16.msra.mxu0 %v3177_v34 }
  0x93   :  { %2698 = vmatprep.subr.bf16.mxu0 %v2980_v3 }
  0x96   :  { %2700 = vmatpush3.bf16.msra.mxu0 %v3179_v35  ;;  %v729_v35 = vand.u32 4294901760, %v3383_v1 }
  0x97   :  { %2701 = vmatprep.subr.bf16.mxu0 %v2980_v3 }
  0x98   :  { %v3399_v46 = vsub.f32 %v3383_v1, %v729_v35 }
  0x9a   :  { %2703 = vmatpush3.bf16.msra.mxu0 %v3182_v36  ;;  %v846_v20 = vand.u32 4294901760, %v3399_v46 }
  0x9b   :  { %2704 = vmatprep.subr.bf16.mxu0 %v2980_v3 }
  0x9c   :  { %v847_v4 = vsub.f32 %v3399_v46, %v846_v20 }
  0x9e   :  { %2706 = vmatpush3.bf16.msra.mxu0 %v3184_v37  ;;  %v848_v30 = vand.u32 4294901760, %v847_v4  ;;  %v2771_v4 = vpack.c.bf16 %v3240_v7, %v3235_v6 }
  0x9f   :  { %2707 = vmatprep.subr.bf16.mxu0 %v2980_v3 }
  0xa2   :  { %2709 = vmatpush3.bf16.msra.mxu0 %v3186_v39  ;;  %v833_v39 = vsub.f32 %v3373_v63, %v832_v32 }
  0xa3   :  { %2710 = vmatprep.subr.bf16.mxu0 %v2980_v3 }
  0xa4   :  { %v834_v49 = vand.u32 4294901760, %v833_v39  ;;  %v44_v39 = vld [vmem:[%s3708_s1] sm:$0x1] }
  0xa5   :  { %2277 = vmatmul.mubr.f32.vlgmr.msra.gmra.mrb[0].mxu0 %v3087_v31 }
  0xa6   :  { %2712 = vmatpush3.bf16.msra.mxu0 %v3048_v12  ;;  %2311 = vmatprep.mubr.msk.f32.mxu0 %vm2981_vm0, %v2982_v8  ;;  %v3334_v12 = vld [vmem:[%s3709_s2 + $0x10] sm:$0xff] }
  0xa7   :  { %2713 = vmatprep.subr.bf16.mxu0 %v2980_v3 }
  0xaa   :  { %2715 = vmatpush3.bf16.msra.mxu0 %v3051_v13  ;;  %v693_v13 = vld [vmem:[%s3709_s2 + $0x18] sm:$0xff] }
  0xab   :  { %2716 = vmatprep.subr.bf16.mxu0 %v2980_v3 }
  0xae   :  { %2718 = vmatpush3.bf16.msra.mxu0 %v3061_v18  ;;  %v714_v18 = vand.u32 4294901760, %v3334_v12 }
  0xaf   :  { %2719 = vmatprep.subr.bf16.mxu0 %v2980_v3 }
  0xb2   :  { %2721 = vmatpush3.bf16.msra.mxu0 %v3078_v26  ;;  %v717_v26 = vand.u32 4294901760, %v693_v13 }
  0xb3   :  { %2722 = vmatprep.subr.bf16.mxu0 %v2980_v3 }
  0xb4   :  { %v3343_v45 = vsub.f32 %v693_v13, %v717_v26  ;;  %v3447_v50 = vpack.c.bf16 %v717_v26, %v714_v18  ;;  %v867_v13 = vand.u32 4294901760, %v3443_v44 }
  0xb6   :  { %2724 = vmatpush3.bf16.msra.mxu0 %v3104_v38  ;;  %v3341_v38 = vsub.f32 %v3334_v12, %v714_v18  ;;  %v862_v12 = vand.u32 4294901760, %v861_v43  ;;  %v1306_v43 = vld [vmem:[%s3711_s4 + $0x30] sm:$0xff] }
  0xb7   :  { %2725 = vmatprep.subr.bf16.mxu0 %v2980_v3 }
  0xb8   :  { %v811_v54 = vand.u32 4294901760, %v3341_v38  ;;  %v2774_v52 = vpack.c.bf16 %v3343_v45, %v3341_v38 }
  0xba   :  { %2727 = vmatpush3.bf16.msra.mxu0 %v3128_v55  ;;  %v818_v55 = vand.u32 4294901760, %v3343_v45  ;;  %v812_v60 = vsub.f32 %v3341_v38, %v811_v54  ;;  %v1300_v38 = vld [vmem:[%s3711_s4] sm:$0xff] }
  0xbb   :  { %2728 = vmatprep.subr.bf16.mxu0 %v2980_v3 }
  0xbc   :  { %v819_v61 = vsub.f32 %v3343_v45, %v818_v55  ;;  %v813_v2 = vand.u32 4294901760, %v812_v60  ;;  %v874_v60 = vand.u32 4294901760, %v3445_v15  ;;  %v2810_v40 = vpack.c.bf16 %v818_v55, %v811_v54  ;;  %v1301_v45 = vld [vmem:[%s3711_s4 + $0x8] sm:$0xff] }
  0xbd   :  { %v1314_v54 = vand.u32 4294901760, %v1300_v38  ;;  %v1317_v55 = vand.u32 4294901760, %v1301_v45 }
  0xbe   :  { %2730 = vmatpush3.bf16.msra.mxu0 %v3140_v62  ;;  %v820_v28 = vand.u32 4294901760, %v819_v61  ;;  %v2765_v61 = vpack.c.bf16 %v862_v12, %v855_v51  ;;  %v875_v18 = vsub.f32 %v3445_v15, %v874_v60  ;;  %v1332_v12 = vand.u32 4294901760, %v1306_v43 }
  0xbf   :  { %2731 = vmatprep.subr.bf16.mxu0 %v2980_v3 }
  0xc0   :  { %v2756_v36 = vpack.c.bf16 %v820_v28, %v813_v2  ;;  %v876_v2 = vand.u32 4294901760, %v875_v18  ;;  %v3624_v18 = vsub.f32 %v1306_v43, %v1332_v12 }
  0xc2   :  { %2733 = vmatpush3.bf16.msra.mxu0 %v3144_v0  ;;  %v3378_v0 = vld [vmem:[%s3709_s2 + $0x30] sm:$0xff]  ;;  %2757 = vmatpush3.bf16.msra.mxu1 %v2756_v36 }
  0xc3   :  { %2734 = vmatprep.subr.bf16.mxu0 %v2980_v3  ;;  %v726_v34 = vand.u32 4294901760, %v3378_v0  ;;  %2758 = vmatprep.subr.bf16.mxu1 %v2980_v3 }
  0xc5   :  { %2312 = vmatmul.mubr.f32.vlgmr.msra.gmra.mrb[0].mxu0 %v3087_v31  ;;  %v3348_v31 = vld [vmem:[%s3709_s2 + $0x20] sm:$0xff]  ;;  %v3396_v16 = vsub.f32 %v3378_v0, %v726_v34  ;;  %v868_v0 = vsub.f32 %v3443_v44, %v867_v13  ;;  %v3469_v36 = vpack.c.bf16 %v729_v35, %v726_v34  ;;  %v2783_v35 = vpack.c.bf16 %v3412_v5, %v3410_v57 }
  0xc6   :  { %2338 = vmatprep.mubr.msk.f32.mxu0 %vm2981_vm0, %v2982_v8  ;;  %v720_v58 = vand.u32 4294901760, %v3348_v31  ;;  %2736 = vmatpush3.bf16.msra.mxu0 %v3418_v22 }
  0xc7   :  { %v839_v19 = vand.u32 4294901760, %v3396_v16  ;;  %2737 = vmatprep.subr.bf16.mxu0 %v2980_v3  ;;  %v869_v1 = vand.u32 4294901760, %v868_v0  ;;  %v2780_v34 = vpack.c.bf16 %v3399_v46, %v3396_v16 }
  0xc8   :  { %v3368_v62 = vsub.f32 %v3348_v31, %v720_v58  ;;  %v3464_v26 = vpack.c.bf16 %v723_v59, %v720_v58  ;;  %v3474_v31 = vpack.c.bf16 %v735_v56, %v732_v53  ;;  %v3480_v58 = vpack.c.bf16 %v741_v10, %v738_v25 }
  0xc9   :  { %v840_v14 = vsub.f32 %v3396_v16, %v839_v19  ;;  %v2768_v28 = vpack.c.bf16 %v876_v2, %v869_v1  ;;  %v2816_v7 = vpack.c.bf16 %v846_v20, %v839_v19  ;;  %v1304_v19 = vld [vmem:[%s3711_s4 + $0x20] sm:$0xff]  ;;  %v1305_v20 = vld [vmem:[%s3711_s4 + $0x28] sm:$0xff] }
  0xca   :  { %v825_v29 = vand.u32 4294901760, %v3368_v62  ;;  %2739 = vmatpush3.bf16.msra.mxu0 %v3447_v50  ;;  %v2777_v59 = vpack.c.bf16 %v3373_v63, %v3368_v62  ;;  %v1302_v63 = vld [vmem:[%s3711_s4 + $0x10] sm:$0xff]  ;;  %v1326_v57 = vand.u32 4294901760, %v1304_v19  ;;  %v1329_v5 = vand.u32 4294901760, %v1305_v20 }
  0xcb   :  { %v841_v11 = vand.u32 4294901760, %v840_v14  ;;  %2740 = vmatprep.subr.bf16.mxu0 %v2980_v3 }
  0xcc   :  { %v826_v37 = vsub.f32 %v3368_v62, %v825_v29  ;;  %v2813_v6 = vpack.c.bf16 %v832_v32, %v825_v29  ;;  %v3578_v62 = vpack.c.bf16 %v1317_v55, %v1314_v54  ;;  %v1303_v29 = vld [vmem:[%s3711_s4 + $0x18] sm:$0xff]  ;;  %v1320_v32 = vand.u32 4294901760, %v1302_v63 }
  0xcd   :  { %v2762_v41 = vpack.c.bf16 %v848_v30, %v841_v11  ;;  %v2807_v30 = vpack.c.bf16 %v804_v9, %v797_v42  ;;  %v2819_v42 = vpack.c.bf16 %v860_v24, %v853_v27  ;;  %v2822_v9 = vpack.c.bf16 %v874_v60, %v867_v13 }
  0xce   :  { %v827_v17 = vand.u32 4294901760, %v826_v37  ;;  %2742 = vmatpush3.bf16.msra.mxu0 %v3464_v26  ;;  %v2786_v37 = vpack.c.bf16 %v3445_v15, %v3443_v44  ;;  %v1323_v16 = vand.u32 4294901760, %v1303_v29  ;;  %v3600_v27 = vsub.f32 %v1301_v45, %v1317_v55  ;;  %v1307_v44 = vld [vmem:[%s3711_s4 + $0x38] sm:$0xff] }
  0xcf   :  { %2743 = vmatprep.subr.bf16.mxu0 %v2980_v3  ;;  %v3602_v24 = vpack.c.bf16 %v1329_v5, %v1326_v57  ;;  %v3610_v15 = vsub.f32 %v1302_v63, %v1320_v32  ;;  %v3617_v51 = vsub.f32 %v1305_v20, %v1329_v5  ;;  %v1335_v13 = vand.u32 4294901760, %v1307_v44  ;;  %v702_v63 = vld [vmem:[%s3710_s3] sm:$0x1] }
  0xd0   :  { %v2759_v21 = vpack.c.bf16 %v834_v49, %v827_v17  ;;  %v3588_v46 = vpack.c.bf16 %v1323_v16, %v1320_v32 }
  0xd1   :  { %v3622_v0 = vpack.c.bf16 %v1335_v13, %v1332_v12 }
  0xd2   :  { %2760 = vmatpush3.bf16.msra.mxu1 %v2759_v21  ;;  %2745 = vmatpush3.bf16.msra.mxu0 %v3469_v36 }
  0xd3   :  { %2761 = vmatprep.subr.bf16.mxu1 %v2980_v3  ;;  %2746 = vmatprep.subr.bf16.mxu0 %v2980_v3 }
  0xd6   :  { %2763 = vmatpush3.bf16.msra.mxu1 %v2762_v41  ;;  %2748 = vmatpush3.bf16.msra.mxu0 %v3474_v31  ;;  %v3612_v41 = vsub.f32 %v1303_v29, %v1323_v16 }
  0xd7   :  { %2764 = vmatprep.subr.bf16.mxu1 %v2980_v3  ;;  %2749 = vmatprep.subr.bf16.mxu0 %v2980_v3 }
  0xda   :  { %2766 = vmatpush3.bf16.msra.mxu1 %v2765_v61  ;;  %2751 = vmatpush3.bf16.msra.mxu0 %v3480_v58  ;;  %v1406_v61 = vand.u32 4294901760, %v3600_v27 }
  0xdb   :  { %2767 = vmatprep.subr.bf16.mxu1 %v2980_v3 }
  0xdc   :  { %v1407_v2 = vsub.f32 %v3600_v27, %v1406_v61 }
  0xde   :  { %2769 = vmatpush3.bf16.msra.mxu1 %v2768_v28 }
  0xdf   :  { %2770 = vmatprep.subr.bf16.mxu1 %v2980_v3 }
 0x198   :  { %v682_v47 = vpop.f32.mrb[0].mxu0 }
 0x199   :  { %v2914_v48 = vadd.f32 %v682_v47, %v44_v39  ;;  %v2313_v17 = vpop.f32.mrb[1].mxu0  ;;  %v1434_v47 = vand.u32 4294901760, %v3617_v51 }
 0x19b   :  { %v686_v49 = vmul.f32 0.5, %v2914_v48 }
 0x19d   :  { %2950 = vtanh.f32 %v686_v49  ;;  %v1435_v49 = vsub.f32 %v3617_v51, %v1434_v47 }
 0x1a7   :  { %v2951_v53 = vpop.eup %2950 }
 0x1a8   :  { %v688_v56 = vmul.f32 0.5, %v2951_v53 }
 0x1aa   :  { %v689_v21 = vadd.f32 0.5, %v688_v56  ;;  %v1436_v56 = vand.u32 4294901760, %v1435_v49 }
 0x1ac   :  { %v705_v14 = vsel %vm703_vm1, %v689_v21, 0  ;;  %v1441_v21 = vand.u32 4294901760, %v3624_v18 }
 0x1ad   :  { %v3496_v33 = vand.u32 4294901760, %v705_v14 }
 0x1af   :  { %2366 = vmatmul.mubr.f32.vlgmr.msra.gmra.mrb[0].mxu1 %v3496_v33  ;;  %v785_v23 = vsub.f32 %v705_v14, %v3496_v33 }
 0x1b0   :  { %2772 = vmatpush3.bf16.msra.mxu1 %v2771_v4  ;;  %2392 = vmatprep.mubr.msk.f32.mxu1 %vm2981_vm0, %v2982_v8 }
 0x1b1   :  { %2773 = vmatprep.subr.bf16.mxu1 %v2980_v3  ;;  %v786_v25 = vand.u32 4294901760, %v785_v23 }
 0x1b3   :  { %v787_v10 = vsub.f32 %v785_v23, %v786_v25 }
 0x1b4   :  { %2775 = vmatpush3.bf16.msra.mxu1 %v2774_v52  ;;  %v1408_v52 = vand.u32 4294901760, %v1407_v2 }
 0x1b5   :  { %2776 = vmatprep.subr.bf16.mxu1 %v2980_v3  ;;  %v788_v11 = vand.u32 4294901760, %v787_v10 }
 0x1b7   :  { %2339 = vmatmul.mubr.f32.vlgmr.msra.gmra.mrb[2].mxu0 %v788_v11 }
 0x1b8   :  { %2778 = vmatpush3.bf16.msra.mxu1 %v2777_v59 }
 0x1b9   :  { %2779 = vmatprep.subr.bf16.mxu1 %v2980_v3 }
 0x1bc   :  { %2781 = vmatpush3.bf16.msra.mxu1 %v2780_v34 }
 0x1bd   :  { %2782 = vmatprep.subr.bf16.mxu1 %v2980_v3 }
 0x1c0   :  { %2784 = vmatpush3.bf16.msra.mxu1 %v2783_v35 }
 0x1c1   :  { %2785 = vmatprep.subr.bf16.mxu1 %v2980_v3 }
 0x1c4   :  { %2787 = vmatpush3.bf16.msra.mxu1 %v2786_v37 }
 0x1c5   :  { %2788 = vmatprep.subr.bf16.mxu1 %v2980_v3 }
 0x1c7   :  { %2393 = vmatmul.mubr.f32.vlgmr.msra.gmra.mrb[0].mxu1 %v785_v23 }
 0x1c8   :  { %2790 = vmatpush3.bf16.msra.mxu1 %v3418_v22  ;;  %2419 = vmatprep.mubr.msk.f32.mxu1 %vm2981_vm0, %v2982_v8 }
 0x1c9   :  { %2791 = vmatprep.subr.bf16.mxu1 %v2980_v3 }
 0x1cc   :  { %2793 = vmatpush3.bf16.msra.mxu1 %v3447_v50 }
 0x1cd   :  { %2794 = vmatprep.subr.bf16.mxu1 %v2980_v3 }
 0x1d0   :  { %2796 = vmatpush3.bf16.msra.mxu1 %v3464_v26 }
 0x1d1   :  { %2797 = vmatprep.subr.bf16.mxu1 %v2980_v3 }
 0x1d4   :  { %2799 = vmatpush3.bf16.msra.mxu1 %v3469_v36 }
 0x1d5   :  { %2800 = vmatprep.subr.bf16.mxu1 %v2980_v3 }
 0x1d8   :  { %2802 = vmatpush3.bf16.msra.mxu1 %v3474_v31 }
 0x1d9   :  { %2803 = vmatprep.subr.bf16.mxu1 %v2980_v3 }
 0x1dc   :  { %2805 = vmatpush3.bf16.msra.mxu1 %v3480_v58 }
 0x1dd   :  { %2806 = vmatprep.subr.bf16.mxu1 %v2980_v3 }
 0x1df   :  { %2420 = vmatmul.mubr.f32.vlgmr.msra.gmra.mrb[0].mxu1 %v786_v25 }
 0x1e0   :  { %2808 = vmatpush3.bf16.msra.mxu1 %v2807_v30  ;;  %2446 = vmatprep.mubr.msk.f32.mxu1 %vm2981_vm0, %v2982_v8 }
 0x1e1   :  { %2809 = vmatprep.subr.bf16.mxu1 %v2980_v3 }
 0x1e4   :  { %2811 = vmatpush3.bf16.msra.mxu1 %v2810_v40 }
 0x1e5   :  { %2812 = vmatprep.subr.bf16.mxu1 %v2980_v3 }
 0x1e8   :  { %2814 = vmatpush3.bf16.msra.mxu1 %v2813_v6 }
 0x1e9   :  { %2815 = vmatprep.subr.bf16.mxu1 %v2980_v3 }
 0x1ec   :  { %2817 = vmatpush3.bf16.msra.mxu1 %v2816_v7  ;;  %v2870_v7 = vpack.c.bf16 %v3612_v41, %v3610_v15 }
 0x1ed   :  { %2818 = vmatprep.subr.bf16.mxu1 %v2980_v3 }
 0x1f0   :  { %2820 = vmatpush3.bf16.msra.mxu1 %v2819_v42 }
 0x1f1   :  { %2821 = vmatprep.subr.bf16.mxu1 %v2980_v3 }
 0x1f4   :  { %2823 = vmatpush3.bf16.msra.mxu1 %v2822_v9 }
 0x1f5   :  { %2824 = vmatprep.subr.bf16.mxu1 %v2980_v3 }
 0x1f7   :  { %2447 = vmatmul.mubr.f32.vlgmr.msra.gmra.mrb[0].mxu1 %v3496_v33 }
 0x1f8   :  { %2826 = vmatpush3.bf16.msra.mxu1 %v3418_v22  ;;  %2473 = vmatprep.mubr.msk.f32.mxu1 %vm2981_vm0, %v2982_v8  ;;  %v3598_v22 = vsub.f32 %v1300_v38, %v1314_v54 }
 0x1f9   :  { %2827 = vmatprep.subr.bf16.mxu1 %v2980_v3 }
 0x1fa   :  { %v1399_v60 = vand.u32 4294901760, %v3598_v22  ;;  %v2867_v6 = vpack.c.bf16 %v3600_v27, %v3598_v22 }
 0x1fc   :  { %2829 = vmatpush3.bf16.msra.mxu1 %v3447_v50  ;;  %v3615_v50 = vsub.f32 %v1304_v19, %v1326_v57  ;;  %v1400_v1 = vsub.f32 %v3598_v22, %v1399_v60  ;;  %v2891_v38 = vpack.c.bf16 %v1406_v61, %v1399_v60 }
 0x1fd   :  { %2830 = vmatprep.subr.bf16.mxu1 %v2980_v3 }
 0x1fe   :  { %v1401_v28 = vand.u32 4294901760, %v1400_v1  ;;  %v1427_v39 = vand.u32 4294901760, %v3615_v50  ;;  %v2873_v42 = vpack.c.bf16 %v3617_v51, %v3615_v50 }
 0x200   :  { %2832 = vmatpush3.bf16.msra.mxu1 %v3464_v26  ;;  %v3626_v26 = vsub.f32 %v1307_v44, %v1335_v13  ;;  %v2855_v34 = vpack.c.bf16 %v1408_v52, %v1401_v28  ;;  %v1428_v17 = vsub.f32 %v3615_v50, %v1427_v39  ;;  %v2897_v54 = vpack.c.bf16 %v1434_v47, %v1427_v39 }
 0x201   :  { %2833 = vmatprep.subr.bf16.mxu1 %v2980_v3 }
 0x202   :  { %v1429_v53 = vand.u32 4294901760, %v1428_v17  ;;  %v1448_v14 = vand.u32 4294901760, %v3626_v26  ;;  %v2876_v9 = vpack.c.bf16 %v3626_v26, %v3624_v18 }
 0x204   :  { %2835 = vmatpush3.bf16.msra.mxu1 %v3469_v36  ;;  %v1413_v36 = vand.u32 4294901760, %v3610_v15  ;;  %v2861_v4 = vpack.c.bf16 %v1436_v56, %v1429_v53  ;;  %v1449_v23 = vsub.f32 %v3626_v26, %v1448_v14  ;;  %v2900_v55 = vpack.c.bf16 %v1448_v14, %v1441_v21 }
 0x205   :  { %2836 = vmatprep.subr.bf16.mxu1 %v2980_v3 }
 0x206   :  { %v1450_v11 = vand.u32 4294901760, %v1449_v23 }
 0x208   :  { %2838 = vmatpush3.bf16.msra.mxu1 %v3474_v31  ;;  %v1420_v31 = vand.u32 4294901760, %v3612_v41 }
 0x209   :  { %2839 = vmatprep.subr.bf16.mxu1 %v2980_v3 }
 0x20a   :  { %v1421_v59 = vsub.f32 %v3612_v41, %v1420_v31  ;;  %v2894_v45 = vpack.c.bf16 %v1420_v31, %v1413_v36 }
 0x20c   :  { %2841 = vmatpush3.bf16.msra.mxu1 %v3480_v58  ;;  %v1414_v58 = vsub.f32 %v3610_v15, %v1413_v36  ;;  %v1422_v37 = vand.u32 4294901760, %v1421_v59 }
 0x20d   :  { %2842 = vmatprep.subr.bf16.mxu1 %v2980_v3 }
 0x20e   :  { %v1415_v35 = vand.u32 4294901760, %v1414_v58 }
 0x20f   :  { %2474 = vmatmul.mubr.f32.vlgmr.msra.gmra.mrb[0].mxu1 %v3496_v33  ;;  %v1442_v33 = vsub.f32 %v3624_v18, %v1441_v21 }
 0x210   :  { %2492 = vmatprep.mubr.msk.f32.mxu1 %vm2981_vm0, %v2982_v8  ;;  %2844 = vmatpush3.bf16.msra.mxu1 %v3578_v62  ;;  %v2858_v48 = vpack.c.bf16 %v1422_v37, %v1415_v35 }
 0x211   :  { %2845 = vmatprep.subr.bf16.mxu1 %v2980_v3  ;;  %v1443_v10 = vand.u32 4294901760, %v1442_v33 }
 0x213   :  { %v2864_v40 = vpack.c.bf16 %v1450_v11, %v1443_v10 }
 0x214   :  { %2847 = vmatpush3.bf16.msra.mxu1 %v3588_v46 }
 0x215   :  { %2848 = vmatprep.subr.bf16.mxu1 %v2980_v3 }
 0x218   :  { %2850 = vmatpush3.bf16.msra.mxu1 %v3602_v24 }
 0x219   :  { %2851 = vmatprep.subr.bf16.mxu1 %v2980_v3 }
 0x21c   :  { %2853 = vmatpush3.bf16.msra.mxu1 %v3622_v0 }
 0x21d   :  { %2854 = vmatprep.subr.bf16.mxu1 %v2980_v3 }
 0x28a   :  { %v790_v25 = vpop.f32.mrb[2].mxu0 }
 0x28b   :  { %v2340_v30 = vpop.f32.mrb[3].mxu0  ;;  %v791_v29 = vadd.f32 %v790_v25, %v702_v63 }
 0x2e2   :  { %v1292_v32 = vpop.f32.mrb[0].mxu1 }
 0x2e3   :  { %v2916_v16 = vadd.f32 %v1292_v32, %v791_v29  ;;  %v2475_v19 = vpop.f32.mrb[1].mxu1 }
 0x2e5   :  { %v1296_v20 = vmul.f32 0.5, %v2916_v16 }
 0x2e7   :  { %2952 = vtanh.f32 %v1296_v20 }
 0x2f1   :  { %v2953_v57 = vpop.eup %2952 }
 0x2f2   :  { %v1298_v5 = vmul.f32 0.5, %v2953_v57 }
 0x2f4   :  { %v1299_v22 = vadd.f32 0.5, %v1298_v5 }
 0x2f6   :  { %v1311_v27 = vsel %vm1309_vm2, %v1299_v22, 0 }
 0x2f7   :  { %v1386_v43 = vand.u32 4294901760, %v1311_v27 }
 0x2f9   :  { %v1387_v44 = vsub.f32 %v1311_v27, %v1386_v43 }
 0x2fb   :  { %v1388_v15 = vand.u32 4294901760, %v1387_v44 }
 0x2fd   :  { %v1389_v41 = vsub.f32 %v1387_v44, %v1388_v15 }
 0x2ff   :  { %v1390_v50 = vand.u32 4294901760, %v1389_v41 }
 0x301   :  { %2493 = vmatmul.mubr.f32.vlgmr.msra.gmra.mrb[2].mxu1 %v1390_v50 }
 0x302   :  { %2856 = vmatpush3.bf16.msra.mxu1 %v2855_v34  ;;  %2511 = vmatprep.mubr.msk.f32.mxu1 %vm2981_vm0, %v2982_v8 }
 0x303   :  { %2857 = vmatprep.subr.bf16.mxu1 %v2980_v3 }
 0x306   :  { %2859 = vmatpush3.bf16.msra.mxu1 %v2858_v48 }
 0x307   :  { %2860 = vmatprep.subr.bf16.mxu1 %v2980_v3 }
 0x30a   :  { %2862 = vmatpush3.bf16.msra.mxu1 %v2861_v4 }
 0x30b   :  { %2863 = vmatprep.subr.bf16.mxu1 %v2980_v3 }
 0x30e   :  { %2865 = vmatpush3.bf16.msra.mxu1 %v2864_v40 }
 0x30f   :  { %2866 = vmatprep.subr.bf16.mxu1 %v2980_v3 }
 0x311   :  { %2512 = vmatmul.mubr.f32.vlgmr.msra.gmra.mrb[2].mxu1 %v1386_v43 }
 0x312   :  { %2868 = vmatpush3.bf16.msra.mxu1 %v2867_v6  ;;  %2530 = vmatprep.mubr.msk.f32.mxu1 %vm2981_vm0, %v2982_v8 }
 0x313   :  { %2869 = vmatprep.subr.bf16.mxu1 %v2980_v3 }
 0x316   :  { %2871 = vmatpush3.bf16.msra.mxu1 %v2870_v7 }
 0x317   :  { %2872 = vmatprep.subr.bf16.mxu1 %v2980_v3 }
 0x31a   :  { %2874 = vmatpush3.bf16.msra.mxu1 %v2873_v42 }
 0x31b   :  { %2875 = vmatprep.subr.bf16.mxu1 %v2980_v3 }
 0x31e   :  { %2877 = vmatpush3.bf16.msra.mxu1 %v2876_v9 }
 0x31f   :  { %2878 = vmatprep.subr.bf16.mxu1 %v2980_v3 }
 0x321   :  { %2531 = vmatmul.mubr.f32.vlgmr.msra.gmra.mrb[2].mxu1 %v1387_v44 }
 0x322   :  { %2880 = vmatpush3.bf16.msra.mxu1 %v3578_v62  ;;  %2549 = vmatprep.mubr.msk.f32.mxu1 %vm2981_vm0, %v2982_v8 }
 0x323   :  { %2881 = vmatprep.subr.bf16.mxu1 %v2980_v3 }
 0x326   :  { %2883 = vmatpush3.bf16.msra.mxu1 %v3588_v46 }
 0x327   :  { %2884 = vmatprep.subr.bf16.mxu1 %v2980_v3 }
 0x32a   :  { %2886 = vmatpush3.bf16.msra.mxu1 %v3602_v24 }
 0x32b   :  { %2887 = vmatprep.subr.bf16.mxu1 %v2980_v3 }
 0x32e   :  { %2889 = vmatpush3.bf16.msra.mxu1 %v3622_v0 }
 0x32f   :  { %2890 = vmatprep.subr.bf16.mxu1 %v2980_v3 }
 0x331   :  { %2550 = vmatmul.mubr.f32.vlgmr.msra.gmra.mrb[2].mxu1 %v1388_v15 }
 0x332   :  { %2892 = vmatpush3.bf16.msra.mxu1 %v2891_v38  ;;  %2568 = vmatprep.mubr.msk.f32.mxu1 %vm2981_vm0, %v2982_v8 }
 0x333   :  { %2893 = vmatprep.subr.bf16.mxu1 %v2980_v3 }
 0x336   :  { %2895 = vmatpush3.bf16.msra.mxu1 %v2894_v45 }
 0x337   :  { %2896 = vmatprep.subr.bf16.mxu1 %v2980_v3 }
 0x33a   :  { %2898 = vmatpush3.bf16.msra.mxu1 %v2897_v54 }
 0x33b   :  { %2899 = vmatprep.subr.bf16.mxu1 %v2980_v3 }
 0x33e   :  { %2901 = vmatpush3.bf16.msra.mxu1 %v2900_v55 }
 0x33f   :  { %2902 = vmatprep.subr.bf16.mxu1 %v2980_v3 }
 0x341   :  { %2569 = vmatmul.mubr.f32.vlgmr.msra.gmra.mrb[2].mxu1 %v1386_v43 }
 0x342   :  { %2904 = vmatpush3.bf16.msra.mxu1 %v3578_v62  ;;  %2587 = vmatprep.mubr.msk.f32.mxu1 %vm2981_vm0, %v2982_v8  ;;  %v1308_v62 = vld [vmem:[%s3712_s5] sm:$0x1] }
 0x343   :  { %2905 = vmatprep.subr.bf16.mxu1 %v2980_v3 }
 0x346   :  { %2907 = vmatpush3.bf16.msra.mxu1 %v3588_v46 }
 0x347   :  { %2908 = vmatprep.subr.bf16.mxu1 %v2980_v3 }
 0x34a   :  { %2910 = vmatpush3.bf16.msra.mxu1 %v3602_v24 }
 0x34b   :  { %2911 = vmatprep.subr.bf16.mxu1 %v2980_v3 }
 0x34e   :  { %2913 = vmatpush3.bf16.msra.mxu1 %v3622_v0 }
 0x351   :  { %2588 = vmatmul.mubr.f32.vlgmr.msra.gmra.mrb[2].mxu1 %v1386_v43 }
 0x424   :  { %v1846_v51 = vpop.f32.mrb[2].mxu1 }
 0x425   :  { %v2917_v12 = vadd.f32 %v1846_v51, %v1308_v62  ;;  %v2589_v8 = vpop.f32.mrb[3].mxu1 }
 0x427   :  { %v1850_v13 = vmul.f32 0.5, %v2917_v12 }
 0x429   :  { %2954 = vtanh.f32 %v1850_v13 }
 0x433   :  { %v2955_v60 = vpop.eup %2954 }
 0x434   :  { %v1852_v46 = vmul.f32 0.5, %v2955_v60 }
 0x436   :  { %v1853_v24 = vadd.f32 0.5, %v1852_v46 }
 0x438   :  { %1855 = vst.msk [vmem:[#allocation2] sm:$0x1] %vm1854_vm3, %v1853_v24 }
 0x439   :  { %2967 = shalt.err (!%p2964_p4)
}
 0x43a   :  { %s2968_s8 = scalar_lea.hbm %s3714_s7, 16 }
 0x43b   :  { %p2969_p5 = scmp.ne.s32.totalorder %s3714_s7, %s2968_s8  ;;  %p2972_p6 = scmp.lt.u32.totalorder %s2968_s8, %s3714_s7 }
 0x43d   :  { %p2974_p7 = pnand %p2972_p6, %p2969_p5 }
 0x43f   :  { %2977 = shalt.err (!%p2974_p7)
}
 0x440   :  { %1865 = dma.vmem_to_hbm [thread:$0]  %s1863_s27, 16, %s3714_s7, [#allocation3]  }
 0x441   :  { %2978 = dma.done.wait [#allocation3], 16  }
 0x442   :  { %2979 = vsyncadd [#allocation3], 4294967280 }
 0x443   :  { %1869 = vsyncpa [#allocation3], 1 }

</bundles_post_ra>
